<compile_context>
chip_gen: v7x
topology: tpu7x:2x2x1
jax: 0.10.0
libtpu: 0.0.40
codegen_flags: <defaults>
</compile_context>

<pallas_src>
import functools

import jax
import jax.numpy as jnp
import numpy as np
from jax.experimental import pallas as pl
from jax.experimental.pallas import tpu as pltpu

NEG_SLOPE = 0.2


def _leaky_relu(x, slope=NEG_SLOPE):
    return jnp.where(x > 0, x, slope * x)


# ----------------------------------------------------------------------------
# Kernel A: linear projection + per-node attention logits
# ----------------------------------------------------------------------------
def proj_kernel(featT_ref, w_ref, b_ref, ssrcT_ref, sdstT_ref,
                z_ref, esrc_ref, edst_ref, *, num_heads, head_dim, neg_slope):
    # featT [I, TN] (bf16), w [H*D, I] (bf16), b [H*D, 1] f32,
    # ssrcT/sdstT [H, H*D] f32 (block-diagonal attention weights)
    z = jnp.dot(w_ref[...], featT_ref[...],
                preferred_element_type=jnp.float32)            # [H*D, TN] f32
    z = _leaky_relu(z + b_ref[...], neg_slope)

    # e[h, n] = sum_d z[h*D+d, n] * w_att[h, d]   (native-orientation MXU matmuls)
    esrc_ref[...] = jnp.dot(ssrcT_ref[...], z,
                            preferred_element_type=jnp.float32)  # [H, TN]
    edst_ref[...] = jnp.dot(sdstT_ref[...], z,
                            preferred_element_type=jnp.float32)  # [H, TN]

    # Store z per head as [H, D, TN] (bf16) for the aggregation kernel.
    for h in range(num_heads):
        z_ref[h] = z[h * head_dim:(h + 1) * head_dim, :].astype(z_ref.dtype)


# ----------------------------------------------------------------------------
# Kernel B: masked online softmax over src tiles + aggregation
# ----------------------------------------------------------------------------
def attn_kernel(edst_ref, esrc_ref, z_ref, dist_ref,
                out_ref, m_ref, l_ref,
                m_sc, l_sc, acc_sc, *, num_heads, head_dim, neg_slope):
    ki = pl.program_id(1)

    @pl.when(ki == 0)
    def _():
        m_sc[...] = jnp.full_like(m_sc, -1e30)
        l_sc[...] = jnp.zeros_like(l_sc)
        acc_sc[...] = jnp.zeros_like(acc_sc)

    dist = dist_ref[...].astype(jnp.float32)                    # [H, TQ, TK]
    mask = dist > 0.0

    # u_add_v + leaky_relu, masked to the edge set.
    s = _leaky_relu(edst_ref[...][:, :, None] + esrc_ref[...][:, None, :],
                    neg_slope)                                  # [H, TQ, TK]
    s = jnp.where(mask, s, -1e30)

    m_prev = m_sc[...]                                          # [H, TQ, 1]
    m_new = jnp.maximum(m_prev, jnp.max(s, axis=-1, keepdims=True))
    alpha = jnp.exp(m_prev - m_new)
    p = jnp.where(mask, jnp.exp(s - m_new), 0.0)                # [H, TQ, TK] f32
    l_sc[...] = alpha * l_sc[...] + jnp.sum(p, axis=-1, keepdims=True)

    # Fold dist into the probabilities, cast to bf16 for the MXU aggregation.
    pd = (p * dist).astype(z_ref.dtype)
    acc_sc[...] = alpha * acc_sc[...] + jnp.einsum(
        'hqk,hdk->hqd', pd, z_ref[...], preferred_element_type=jnp.float32)
    m_sc[...] = m_new

    @pl.when(ki == pl.num_programs(1) - 1)
    def _():
        l = l_sc[...]
        inv = pl.reciprocal(jnp.maximum(l, 1e-30), approx=True)  # [H, TQ, 1]
        norm = acc_sc[...] * inv                                 # [H, TQ, D]
        for h in range(num_heads):  # lane-dense [TQ, H*D] output store
            out_ref[:, h * head_dim:(h + 1) * head_dim] = norm[h].astype(out_ref.dtype)
        m_ref[...] = m_sc[...]
        l_ref[...] = l


# ----------------------------------------------------------------------------
# Wrapper
# ----------------------------------------------------------------------------
def gat_forward(feat, dist, src_idx, dst_idx, params, num_heads, out_dim, *,
                negative_slope=NEG_SLOPE, tile=128, matmul_dtype=jnp.bfloat16):
    """Returns (dst [N, H*D], myattention [E, H, 1]) — same as the torch module."""
    N, in_dim = feat.shape
    H, D = num_heads, out_dim
    HD = H * D
    E = src_idx.shape[0]
    W, b, w_att_src, w_att_dst = params

    Np = ((N + tile - 1) // tile) * tile
    n_tiles = Np // tile

    # --- plain-JAX glue: pad, transpose, densify the sparse graph ---
    feat_p = jnp.zeros((Np, in_dim), jnp.float32).at[:N].set(feat)
    feat_t = feat_p.T.astype(matmul_dtype)                      # [I, Np]
    w_m = W.astype(matmul_dtype)                                # [H*D, I]
    b_col = b.reshape(HD, 1).astype(jnp.float32)

    eye_h = jnp.eye(H, dtype=jnp.float32)
    s_src_t = (eye_h[:, :, None] * w_att_src.reshape(H, D)[None, :, :]).reshape(H, HD)
    s_dst_t = (eye_h[:, :, None] * w_att_dst.reshape(H, D)[None, :, :]).reshape(H, HD)

    dist2 = dist.reshape(E, H).astype(jnp.float32)
    dist_dense = jnp.zeros((H, Np, Np), matmul_dtype).at[:, dst_idx, src_idx].set(
        dist2.T.astype(matmul_dtype))

    # --- Kernel A: projection + logits ---
    z_hdn, e_src, e_dst = pl.pallas_call(
        functools.partial(proj_kernel, num_heads=H, head_dim=D,
                          neg_slope=negative_slope),
        out_shape=(jax.ShapeDtypeStruct((H, D, Np), matmul_dtype),
                   jax.ShapeDtypeStruct((H, Np), jnp.float32),
                   jax.ShapeDtypeStruct((H, Np), jnp.float32)),
        grid_spec=pltpu.PrefetchScalarGridSpec(
            num_scalar_prefetch=0,
            grid=(n_tiles,),
            in_specs=[
                pl.BlockSpec((in_dim, tile), lambda ti: (0, ti)),   # feat^T tile
                pl.BlockSpec((HD, in_dim), lambda ti: (0, 0)),      # W (resident)
                pl.BlockSpec((HD, 1), lambda ti: (0, 0)),           # b (resident)
                pl.BlockSpec((H, HD), lambda ti: (0, 0)),           # S_src^T
                pl.BlockSpec((H, HD), lambda ti: (0, 0)),           # S_dst^T
            ],
            out_specs=[
                pl.BlockSpec((H, D, tile), lambda ti: (0, 0, ti)),
                pl.BlockSpec((H, tile), lambda ti: (0, ti)),
                pl.BlockSpec((H, tile), lambda ti: (0, ti)),
            ]),
        compiler_params=pltpu.CompilerParams(dimension_semantics=("parallel",)),
    )(feat_t, w_m, b_col, s_src_t, s_dst_t)

    # --- Kernel B: online-softmax attention + aggregation ---
    out_p, m_out, l_out = pl.pallas_call(
        functools.partial(attn_kernel, num_heads=H, head_dim=D,
                          neg_slope=negative_slope),
        out_shape=(jax.ShapeDtypeStruct((Np, HD), jnp.float32),
                   jax.ShapeDtypeStruct((H, Np, 1), jnp.float32),
                   jax.ShapeDtypeStruct((H, Np, 1), jnp.float32)),
        grid_spec=pltpu.PrefetchScalarGridSpec(
            num_scalar_prefetch=0,
            grid=(n_tiles, n_tiles),
            in_specs=[
                pl.BlockSpec((H, tile), lambda qi, ki: (0, qi)),        # e_dst
                pl.BlockSpec((H, tile), lambda qi, ki: (0, ki)),        # e_src
                pl.BlockSpec((H, D, tile), lambda qi, ki: (0, 0, ki)),  # z (src)
                pl.BlockSpec((H, tile, tile), lambda qi, ki: (0, qi, ki)),  # dist
            ],
            out_specs=[
                pl.BlockSpec((tile, HD), lambda qi, ki: (qi, 0)),       # lane-dense out
                pl.BlockSpec((H, tile, 1), lambda qi, ki: (0, qi, 0)),  # softmax max
                pl.BlockSpec((H, tile, 1), lambda qi, ki: (0, qi, 0)),  # softmax sum
            ],
            scratch_shapes=[
                pltpu.VMEM((H, tile, 1), jnp.float32),
                pltpu.VMEM((H, tile, 1), jnp.float32),
                pltpu.VMEM((H, tile, D), jnp.float32),
            ]),
        compiler_params=pltpu.CompilerParams(
            dimension_semantics=("parallel", "arbitrary")),
    )(e_dst, e_src, z_hdn, dist_dense)

    # --- plain-JAX glue: unpad + reconstruct per-edge attention from (m, l) ---
    dst_out = out_p[:N]                                          # [N, H*D]
    m = m_out[:, :, 0]                                           # [H, Np]
    l = l_out[:, :, 0]
    e_edge = _leaky_relu(e_src[:, src_idx] + e_dst[:, dst_idx], negative_slope)  # [H, E]
    att = jnp.exp(e_edge - m[:, dst_idx]) / jnp.maximum(l[:, dst_idx], 1e-30)
    myattention = att.T[:, :, None]                              # [E, H, 1]
    return dst_out, myattention


# ----------------------------------------------------------------------------
# Pure-JAX edge-list reference (mirrors the DGL semantics of the torch module)
# ----------------------------------------------------------------------------
def reference(feat, dist, src_idx, dst_idx, params, H, D):
    W, b, w_att_src, w_att_dst = params
    N = feat.shape[0]
    E = src_idx.shape[0]
    z = _leaky_relu(feat @ W.T + b)
    z3 = z.reshape(N, H, D)
    e_src = jnp.sum(z3 * w_att_src, axis=-1)                  # [N, H]
    e_dst = jnp.sum(z3 * w_att_dst, axis=-1)                  # [N, H]
    e = _leaky_relu(e_src[src_idx] + e_dst[dst_idx])          # [E, H]
    m = jax.ops.segment_max(e, dst_idx, num_segments=N)
    p = jnp.exp(e - m[dst_idx])
    denom = jax.ops.segment_sum(p, dst_idx, num_segments=N)
    att = p / denom[dst_idx]                                  # [E, H]
    a = att * dist.reshape(E, H)
    msg = z3[src_idx] * a[:, :, None]                         # [E, H, D]
    ft = jax.ops.segment_sum(msg, dst_idx, num_segments=N)    # [N, H, D]
    return ft.reshape(N, H * D), att[:, :, None]


if __name__ == "__main__":
    # Small deterministic setup (multi-tile: N=200 pads to 256 -> 2x2 grid in kernel B)
    N, in_dim, out_dim, num_heads = 200, 32, 16, 4
    H, D = num_heads, out_dim

    key = jax.random.PRNGKey(0)
    k_feat, k_W, k_b, k_ws, k_wd, k_dist = jax.random.split(key, 6)

    # Graph: self-loops + ring  -> E = 2N edges
    src_np = np.concatenate([np.arange(N), np.arange(N)]).astype(np.int32)
    dst_np = np.concatenate([np.arange(N), (np.arange(N) + 1) % N]).astype(np.int32)
    src_idx = jnp.asarray(src_np)
    dst_idx = jnp.asarray(dst_np)
    E = src_idx.shape[0]

    feat = jax.random.normal(k_feat, (N, in_dim), jnp.float32)
    dist = jax.random.uniform(k_dist, (E, H), jnp.float32, 0.1, 2.0)

    # Deterministic parameter init (matches module shapes)
    W = jax.random.normal(k_W, (H * D, in_dim), jnp.float32) * 0.1   # nn.Linear weight
    b = jax.random.normal(k_b, (H * D,), jnp.float32) * 0.1          # nn.Linear bias
    w_att_src = jax.random.normal(k_ws, (1, H, D), jnp.float32)
    w_att_dst = jax.random.normal(k_wd, (1, H, D), jnp.float32)
    params = (W, b, w_att_src, w_att_dst)

    dst_out, myatt = gat_forward(feat, dist, src_idx, dst_idx, params, H, D)
    jax.block_until_ready((dst_out, myatt))

    ref_out, ref_att = reference(feat, dist, src_idx, dst_idx, params, H, D)
    assert dst_out.shape == (N, H * D) and myatt.shape == (E, H, 1)
    # bf16 MXU operands with f32 accumulation -> loose-but-meaningful tolerances
    assert np.allclose(np.asarray(dst_out), np.asarray(ref_out), atol=3e-2, rtol=5e-2)
    assert np.allclose(np.asarray(myatt), np.asarray(ref_att), atol=3e-2, rtol=5e-2)

    print("KERNEL_OK")
</pallas_src>

<mosaic_0001>
module attributes {stable_mosaic.version = 11 : i64} {
  func.func @proj_kernel(%arg0: i32, %arg1: memref<32x128xbf16, #tpu.memory_space<vmem>>, %arg2: memref<64x32xbf16, #tpu.memory_space<vmem>>, %arg3: memref<64x1xf32, #tpu.memory_space<vmem>>, %arg4: memref<4x64xf32, #tpu.memory_space<vmem>>, %arg5: memref<4x64xf32, #tpu.memory_space<vmem>>, %arg6: memref<4x16x128xbf16, #tpu.memory_space<vmem>>, %arg7: memref<4x128xf32, #tpu.memory_space<vmem>>, %arg8: memref<4x128xf32, #tpu.memory_space<vmem>>) attributes {dimension_semantics = [#tpu.dimension_semantics<parallel>], iteration_bounds = array<i64: 2>, scalar_prefetch = 0 : i64, scratch_operands = 0 : i64, tpu.core_type = #tpu.core_type<tc>, window_params = [{transform_indices = @transform_0, window_bounds = array<i64: 32, 128>}, {pipeline_mode = #tpu.pipeline_mode<synchronous>, transform_indices = @transform_1, window_bounds = array<i64: 64, 32>}, {pipeline_mode = #tpu.pipeline_mode<synchronous>, transform_indices = @transform_2, window_bounds = array<i64: 64, 1>}, {pipeline_mode = #tpu.pipeline_mode<synchronous>, transform_indices = @transform_3, window_bounds = array<i64: 4, 64>}, {pipeline_mode = #tpu.pipeline_mode<synchronous>, transform_indices = @transform_4, window_bounds = array<i64: 4, 64>}, {transform_indices = @transform_5, window_bounds = array<i64: 4, 16, 128>}, {transform_indices = @transform_6, window_bounds = array<i64: 4, 128>}, {transform_indices = @transform_7, window_bounds = array<i64: 4, 128>}]} {
    %c0 = arith.constant 0 : index
    %c0_0 = arith.constant 0 : index
    %0 = vector.load %arg2[%c0, %c0_0] : memref<64x32xbf16, #tpu.memory_space<vmem>>, vector<64x32xbf16>
    %c0_1 = arith.constant 0 : index
    %c0_2 = arith.constant 0 : index
    %1 = vector.load %arg1[%c0_1, %c0_2] : memref<32x128xbf16, #tpu.memory_space<vmem>>, vector<32x128xbf16>
    %cst = arith.constant dense<0.000000e+00> : vector<64x128xf32>
    %2 = tpu.matmul %0, %1, %cst {dimension_numbers = #tpu.dot_dimension_numbers<[1], [0], [0], [1], [0, 0, 1, 1], [], []>} : vector<64x32xbf16>, vector<32x128xbf16>, vector<64x128xf32> -> vector<64x128xf32>
    %c0_3 = arith.constant 0 : index
    %c0_4 = arith.constant 0 : index
    %3 = vector.load %arg3[%c0_3, %c0_4] : memref<64x1xf32, #tpu.memory_space<vmem>>, vector<64x1xf32>
    %4 = vector.broadcast %3 : vector<64x1xf32> to vector<64x128xf32>
    %5 = arith.addf %2, %4 : vector<64x128xf32>
    %cst_5 = arith.constant 0.000000e+00 : f32
    %6 = vector.broadcast %cst_5 : f32 to vector<64x128xf32>
    %7 = arith.cmpf ogt, %5, %6 : vector<64x128xf32>
    %cst_6 = arith.constant 2.000000e-01 : f32
    %8 = vector.broadcast %cst_6 : f32 to vector<64x128xf32>
    %9 = arith.mulf %8, %5 : vector<64x128xf32>
    %10 = arith.select %7, %5, %9 : vector<64x128xi1>, vector<64x128xf32>
    %c0_7 = arith.constant 0 : index
    %c0_8 = arith.constant 0 : index
    %11 = vector.load %arg4[%c0_7, %c0_8] : memref<4x64xf32, #tpu.memory_space<vmem>>, vector<4x64xf32>
    %cst_9 = arith.constant dense<0.000000e+00> : vector<4x128xf32>
    %12 = tpu.matmul %11, %10, %cst_9 {dimension_numbers = #tpu.dot_dimension_numbers<[1], [0], [0], [1], [0, 0, 1, 1], [], []>} : vector<4x64xf32>, vector<64x128xf32>, vector<4x128xf32> -> vector<4x128xf32>
    %c0_10 = arith.constant 0 : index
    %c0_11 = arith.constant 0 : index
    %13 = vector.load %arg7[%c0_10, %c0_11] : memref<4x128xf32, #tpu.memory_space<vmem>>, vector<4x128xf32>
    tpu.vector_store %arg7[%c0_10, %c0_11], %12 {strides = array<i32>} : memref<4x128xf32, #tpu.memory_space<vmem>>, vector<4x128xf32>,
    %c0_12 = arith.constant 0 : index
    %c0_13 = arith.constant 0 : index
    %14 = vector.load %arg5[%c0_12, %c0_13] : memref<4x64xf32, #tpu.memory_space<vmem>>, vector<4x64xf32>
    %cst_14 = arith.constant dense<0.000000e+00> : vector<4x128xf32>
    %15 = tpu.matmul %14, %10, %cst_14 {dimension_numbers = #tpu.dot_dimension_numbers<[1], [0], [0], [1], [0, 0, 1, 1], [], []>} : vector<4x64xf32>, vector<64x128xf32>, vector<4x128xf32> -> vector<4x128xf32>
    %c0_15 = arith.constant 0 : index
    %c0_16 = arith.constant 0 : index
    %16 = vector.load %arg8[%c0_15, %c0_16] : memref<4x128xf32, #tpu.memory_space<vmem>>, vector<4x128xf32>
    tpu.vector_store %arg8[%c0_15, %c0_16], %15 {strides = array<i32>} : memref<4x128xf32, #tpu.memory_space<vmem>>, vector<4x128xf32>,
    %17 = vector.extract_strided_slice %10 {offsets = [0, 0], sizes = [16, 128], strides = [1, 1]} : vector<64x128xf32> to vector<16x128xf32>
    %18 = arith.truncf %17 : vector<16x128xf32> to vector<16x128xbf16>
    %c0_17 = arith.constant 0 : index
    %c0_18 = arith.constant 0 : index
    %c0_19 = arith.constant 0 : index
    %19 = vector.load %arg6[%c0_17, %c0_18, %c0_19] : memref<4x16x128xbf16, #tpu.memory_space<vmem>>, vector<1x16x128xbf16>
    %20 = vector.shape_cast %19 : vector<1x16x128xbf16> to vector<16x128xbf16>
    %21 = vector.shape_cast %18 : vector<16x128xbf16> to vector<1x16x128xbf16>
    tpu.vector_store %arg6[%c0_17, %c0_18, %c0_19], %21 {strides = array<i32>} : memref<4x16x128xbf16, #tpu.memory_space<vmem>>, vector<1x16x128xbf16>,
    %22 = vector.extract_strided_slice %10 {offsets = [16, 0], sizes = [16, 128], strides = [1, 1]} : vector<64x128xf32> to vector<16x128xf32>
    %23 = arith.truncf %22 : vector<16x128xf32> to vector<16x128xbf16>
    %c1 = arith.constant 1 : index
    %c0_20 = arith.constant 0 : index
    %c0_21 = arith.constant 0 : index
    %24 = vector.load %arg6[%c1, %c0_20, %c0_21] : memref<4x16x128xbf16, #tpu.memory_space<vmem>>, vector<1x16x128xbf16>
    %25 = vector.shape_cast %24 : vector<1x16x128xbf16> to vector<16x128xbf16>
    %26 = vector.shape_cast %23 : vector<16x128xbf16> to vector<1x16x128xbf16>
    tpu.vector_store %arg6[%c1, %c0_20, %c0_21], %26 {strides = array<i32>} : memref<4x16x128xbf16, #tpu.memory_space<vmem>>, vector<1x16x128xbf16>,
    %27 = vector.extract_strided_slice %10 {offsets = [32, 0], sizes = [16, 128], strides = [1, 1]} : vector<64x128xf32> to vector<16x128xf32>
    %28 = arith.truncf %27 : vector<16x128xf32> to vector<16x128xbf16>
    %c2 = arith.constant 2 : index
    %c0_22 = arith.constant 0 : index
    %c0_23 = arith.constant 0 : index
    %29 = vector.load %arg6[%c2, %c0_22, %c0_23] : memref<4x16x128xbf16, #tpu.memory_space<vmem>>, vector<1x16x128xbf16>
    %30 = vector.shape_cast %29 : vector<1x16x128xbf16> to vector<16x128xbf16>
    %31 = vector.shape_cast %28 : vector<16x128xbf16> to vector<1x16x128xbf16>
    tpu.vector_store %arg6[%c2, %c0_22, %c0_23], %31 {strides = array<i32>} : memref<4x16x128xbf16, #tpu.memory_space<vmem>>, vector<1x16x128xbf16>,
    %32 = vector.extract_strided_slice %10 {offsets = [48, 0], sizes = [16, 128], strides = [1, 1]} : vector<64x128xf32> to vector<16x128xf32>
    %33 = arith.truncf %32 : vector<16x128xf32> to vector<16x128xbf16>
    %c3 = arith.constant 3 : index
    %c0_24 = arith.constant 0 : index
    %c0_25 = arith.constant 0 : index
    %34 = vector.load %arg6[%c3, %c0_24, %c0_25] : memref<4x16x128xbf16, #tpu.memory_space<vmem>>, vector<1x16x128xbf16>
    %35 = vector.shape_cast %34 : vector<1x16x128xbf16> to vector<16x128xbf16>
    %36 = vector.shape_cast %33 : vector<16x128xbf16> to vector<1x16x128xbf16>
    tpu.vector_store %arg6[%c3, %c0_24, %c0_25], %36 {strides = array<i32>} : memref<4x16x128xbf16, #tpu.memory_space<vmem>>, vector<1x16x128xbf16>,
    return
  }
  func.func @transform_0(%arg0: i32) -> (i32, i32) {
    %c0_i32 = arith.constant 0 : i32
    %c0_i32_0 = arith.constant 0 : i32
    return %c0_i32, %arg0 : i32, i32
  }
  func.func @transform_1(%arg0: i32) -> (i32, i32) {
    %c0_i32 = arith.constant 0 : i32
    %c0_i32_0 = arith.constant 0 : i32
    %c0_i32_1 = arith.constant 0 : i32
    return %c0_i32, %c0_i32_0 : i32, i32
  }
  func.func @transform_2(%arg0: i32) -> (i32, i32) {
    %c0_i32 = arith.constant 0 : i32
    %c0_i32_0 = arith.constant 0 : i32
    %c0_i32_1 = arith.constant 0 : i32
    return %c0_i32, %c0_i32_0 : i32, i32
  }
  func.func @transform_3(%arg0: i32) -> (i32, i32) {
    %c0_i32 = arith.constant 0 : i32
    %c0_i32_0 = arith.constant 0 : i32
    %c0_i32_1 = arith.constant 0 : i32
    return %c0_i32, %c0_i32_0 : i32, i32
  }
  func.func @transform_4(%arg0: i32) -> (i32, i32) {
    %c0_i32 = arith.constant 0 : i32
    %c0_i32_0 = arith.constant 0 : i32
    %c0_i32_1 = arith.constant 0 : i32
    return %c0_i32, %c0_i32_0 : i32, i32
  }
  func.func @transform_5(%arg0: i32) -> (i32, i32, i32) {
    %c0_i32 = arith.constant 0 : i32
    %c0_i32_0 = arith.constant 0 : i32
    %c0_i32_1 = arith.constant 0 : i32
    return %c0_i32, %c0_i32_0, %arg0 : i32, i32, i32
  }
  func.func @transform_6(%arg0: i32) -> (i32, i32) {
    %c0_i32 = arith.constant 0 : i32
    %c0_i32_0 = arith.constant 0 : i32
    return %c0_i32, %arg0 : i32, i32
  }
  func.func @transform_7(%arg0: i32) -> (i32, i32) {
    %c0_i32 = arith.constant 0 : i32
    %c0_i32_0 = arith.constant 0 : i32
    return %c0_i32, %arg0 : i32, i32
  }
}

</mosaic_0001>

<bundles_post_ra>
// kernel: tpu_custom_call.1
= control target key start
LH: loop header
LB: loop body
LE: loop exit
PB: predicated region body
PF: predicated region fallthrough
CT: control target
= control target key end

     0   :  { %s1570_s0 = inlined_call_operand.vmem [shape: bf16[32,256], index: 0, kind: input, shape index: {}]   ;;  %s1571_s1 = inlined_call_operand.vmem [shape: bf16[64,32], index: 1, kind: input, shape index: {}]   ;;  %s1572_s2 = inlined_call_operand.vmem [shape: f32[64,1], index: 2, kind: input, shape index: {}]   ;;  %s1573_s3 = inlined_call_operand.vmem [shape: f32[4,64], index: 3, kind: input, shape index: {}]   ;;  %s1574_s4 = inlined_call_operand.vmem [shape: f32[4,64], index: 4, kind: input, shape index: {}]   ;;  %s1575_s5 = inlined_call_operand.hbm [shape: bf16[4,16,256], index: 5, kind: output, shape index: {0}]   ;;  %s1576_s6 = inlined_call_operand.hbm [shape: f32[4,256], index: 6, kind: output, shape index: {1}]   ;;  %s1577_s7 = inlined_call_operand.hbm [shape: f32[4,256], index: 7, kind: output, shape index: {2}]  }
   0x1   :  { %1579 = sst [smem:[#allocation10_spill]] %s1570_s0 }
   0x2   :  { %1580 = sst [smem:[#allocation11_spill]] %s1571_s1 }
   0x3   :  { %1581 = sst [smem:[#allocation12_spill]] %s1572_s2 }
   0x4   :  { %13 = vsyncpa [#allocation4], 0 }
   0x5   :  { %15 = vsyncpa [#allocation4 + $0x1], 0 }
   0x6   :  { %16 = vsyncpa [#allocation6], 0 }
   0x7   :  { %18 = vsyncpa [#allocation6 + $0x1], 0  ;;  %s1326_s24 = smov 0   ;;  %s1328_s25 = smov 0  }
   0x8   :  { %s1330_s26 = smov 0   ;;  %s1332_s27 = smov 0  }
   0x9 LB: > { %s1347_s28 = sadd.s32 4294967295, %s1274_s27   ;;  %s1578_s29 = sadd.s32 4294967294, %s1274_s27   ;;  %s1274_s27 = sphi %s1332_s27, %s1591_s27   ;;  %s1270_s26 = sphi %s1330_s26, %s1590_s26   ;;  %s1266_s25 = sphi %s1328_s25, %s1589_s25   ;;  %s1262_s24 = sphi %s1326_s24, %s1588_s24  }
   0xa   : > { %s1351_s30 = sadd.s32 1, %s1274_s27   ;;  %s31_s8 = sadd.s32 1, %s1270_s26 }
   0xb   : > { %s28_s9 = ssub.s32 %s1274_s27, %s1351_s30  ;;  %p38_p0 = scmp.ne.s32.totalorder %s1270_s26, %s1266_s25 }
   0xc   : > { %p29_p1 = scmp.eq.s32.totalorder %s28_s9, 0  ;;  %p39_p2 = scmp.eq.s32.totalorder %s1274_s27, 0 }
   0xd   : > { %p152_p3 = scmp.eq.s32.totalorder %s1347_s28, 1  ;;  %p157_p4 = scmp.ne.s32.totalorder %s1266_s25, %s1262_s24 }
   0xe   : > { %s1363_s10 = scalar_select %p29_p1, %s1270_s26, %s31_s8  }
   0xf   : > { %p40_p5 = por %p39_p2, %p38_p0  ;;  %p1365_p6 = por %p152_p3, %p38_p0 }
  0x10   : > { %p158_p7 = scmp.eq.s32.totalorder %s1578_s29, 1  ;;  %p917_p9 = scmp.ge.s32.totalorder %s1274_s27, 2 }
  0x12   : > { %p1371_p8 = por %p158_p7, %p157_p4  ;;  %238 = sbr.rel (%p917_p9) target bundleno = 37 (0x25), region = 32 }
  0x19   : > { %241 = sbr.rel (!%p40_p5) target bundleno = 37 (0x25), region = 36  ;;  %s243_s13 = sand.u32 (%p40_p5), 1, %s1270_s26  }
  0x1a   : > { %s919_s14 = sshll.u32 (%p40_p5), %s1274_s27, 2  ;;  %s918_s15 = sshll.u32 (%p40_p5), %s243_s13, 4 }
  0x1b   : > { %s1584_s0 = sld [smem:[#allocation10_spill]] (%p40_p5)  ;;  %s245_s19 = scalar_lea.vmem (%p40_p5), [#allocation2], %s918_s15 }
  0x21   : > { %s247_s18 = scalar_lea.vmem %s1584_s0, %s919_s14 }
  0x22   : > { %v263_v0 = vld [vmem:[%s247_s18] sm:$0xf]  ;;  %v265_v1 = vld [vmem:[%s247_s18 + $0x8] sm:$0xf]  ;;  %v267_v2 = vld [vmem:[%s247_s18 + $0x10] sm:$0xf] }
  0x23   : > { %264 = vst [vmem:[%s245_s19] sm:$0xf] %v263_v0  ;;  %266 = vst [vmem:[%s245_s19 + $0x4] sm:$0xf] %v265_v1  ;;  %v269_v3 = vld [vmem:[%s247_s18 + $0x18] sm:$0xf] }
  0x24   : > { %268 = vst [vmem:[%s245_s19 + $0x8] sm:$0xf] %v267_v2  ;;  %270 = vst [vmem:[%s245_s19 + $0xc] sm:$0xf] %v269_v3 }
  0x25 PF: > { %p920_p10 = scmp.ge.s32.totalorder %s1274_s27, 1  ;;  %p300_p11 = scmp.lt.s32.totalorder %s1274_s27, 3 }
  0x27   : > { %p301_p12 = pnand %p920_p10, %p300_p11 }
  0x28   : > { %s1386_s20 = sand.u32 (!%p301_p12), 1, %s1266_s25   ;;  %s1585_s1 = sld [smem:[#allocation11_spill]] (!%p301_p12)  ;;  %vm441_vm0 = vcmask (!%p301_p12), 261120   ;;  %v1276_v7 = vmov (!%p301_p12), 0   ;;  %v1277_v19 = vmov (!%p301_p12), 0.0|0.0   ;;  %vm1278_vm1 = vmmov (!%p301_p12), 0  }
  0x29   : > { %304 = sbr.rel (%p301_p12) target bundleno = 539 (0x21b), region = 77  ;;  %s921_s23 = sshll.u32 (!%p301_p12), %s1386_s20, 4  ;;  %1144 = vset.pattern.permute.xlu0 (!%p301_p12), %v1276_v7  ;;  %1145 = vset.pattern.permute.xlu1 (!%p301_p12), %v1276_v7  ;;  %v1279_v20 = vmov (!%p301_p12), 0.0   ;;  %v543_v1 = vld [vmem:[%s1573_s3] sm:$0xf] (!%p301_p12)  ;;  %vm544_vm10 = vcmask (!%p301_p12), 523264  }
  0x2a   : > { %s309_s8 = scalar_lea.vmem (!%p301_p12), [#allocation2], %s921_s23  ;;  %s1586_s2 = sld [smem:[#allocation12_spill]] (!%p301_p12)  ;;  %1064 = vmatprep.subr.bf16.mxu1 (!%p301_p12), %v1277_v19  ;;  %1042 = vmatprep.mubr.msk.f32.mxu1 (!%p301_p12), %vm1278_vm1, %v1279_v20  ;;  %v619_v2 = vld [vmem:[%s1574_s4] sm:$0xf] (!%p301_p12) }
  0x2b   : > { %v1146_v5 = vld [vmem:[%s309_s8] sm:$0xff] (!%p301_p12)   ;;  %v1147_v6 = vld [vmem:[%s309_s8 + $0x8] sm:$0xff] (!%p301_p12)   ;;  %s922_s23 = sshll.u32 (!%p301_p12), %s1386_s20, 5  ;;  %s1452_s17 = sshll.u32 (!%p301_p12), %s1347_s28, 6 }
  0x2c   : > { %1014 = vmatprep.subr.bf16.mxu0 (!%p301_p12), %v1146_v5  ;;  %s1432_s8 = scalar_lea.vmem (!%p301_p12), [#allocation3], %s922_s23  ;;  %s1460_s21 = scalar_lea.hbm (!%p301_p12), %s1575_s5, %s1452_s17 }
  0x2d   : > { %1015 = vmatpush3.bf16.msra.mxu0 (!%p301_p12), %v1146_v5  ;;  %s760_s16 = sshll.u32 (!%p301_p12), %s1432_s8, 4  ;;  %s738_s22 = scalar_lea.sflag (!%p301_p12), [#allocation4], %s1386_s20  ;;  %s1454_s16 = int_to_ptr.vmem [resolvable:$true] %s760_s16 }
  0x2e   : > { %v1148_v4 = vld [vmem:[%s1585_s1] sm:$0xff] (!%p301_p12)   ;;  %1016 = vmatprep.subr.bf16.mxu0 (!%p301_p12), %v1147_v6  ;;  %v1149_v11 = vld [vmem:[%s1585_s1 + $0x8] sm:$0xff] (!%p301_p12)   ;;  %v1150_v13 = vld [vmem:[%s1585_s1 + $0x10] sm:$0xff] (!%p301_p12)   ;;  %s1152_s23 = scalar_lea.vmem (!%p301_p12), %s1454_s16, 512 }
  0x2f   : > { %1018 = vmatprep.mubr.msk.bf16.mxu0 (!%p301_p12), %vm441_vm0, %v1148_v4  ;;  %v1151_v17 = vld [vmem:[%s1585_s1 + $0x18] sm:$0xff] (!%p301_p12)   ;;  %p1153_p13 = scmp.ne.s32.totalorder (!%p301_p12), %s1454_s16, %s1152_s23 }
  0x30   : > { %v361_v8 = vld [vmem:[%s1586_s2] sm:$0xff]  ;;  %v363_v9 = vld [vmem:[%s1586_s2 + $0x10] sm:$0xff]  ;;  %v362_v10 = vld [vmem:[%s1586_s2 + $0x8] sm:$0xff] }
  0x31   : > { %371 = vperm.xlu0 %1144, %v361_v8   ;;  %381 = vperm.xlu1 %1145, %v363_v9   ;;  %v364_v12 = vld [vmem:[%s1586_s2 + $0x18] sm:$0xff]  ;;  %v365_v14 = vld [vmem:[%s1586_s2 + $0x20] sm:$0xff]  ;;  %v366_v15 = vld [vmem:[%s1586_s2 + $0x28] sm:$0xff]  ;;  %p1154_p0 = pnand %p1153_p13, %p1365_p6 }
  0x32   : > { %1017 = vmatpush3.bf16.msra.mxu0 %v1147_v6  ;;  %v367_v16 = vld [vmem:[%s1586_s2 + $0x30] sm:$0xff]  ;;  %v368_v18 = vld [vmem:[%s1586_s2 + $0x38] sm:$0xff] }
  0x33   : > { %1076 = vmatprep.subr.bf16.mxu0 %v1277_v19  ;;  %p1155_p1 = pneg %p1154_p0 }
  0x35   : > { %376 = vperm.xlu0 %1144, %v362_v10   ;;  %386 = vperm.xlu1 %1145, %v364_v12  }
  0x36   : > { %1019 = vmatmul.mubr.msk.bf16.vlgmr.msra.gmra.mrb[0].mxu0 %vm441_vm0, %v1149_v11 }
  0x37   : > { %1022 = vmatprep.mubr.msk.bf16.mxu0 %vm441_vm0, %v1150_v13 }
  0x39   : > { %391 = vperm.xlu0 %1144, %v365_v14   ;;  %396 = vperm.xlu1 %1145, %v366_v15  }
  0x3d   : > { %401 = vperm.xlu0 %1144, %v367_v16   ;;  %406 = vperm.xlu1 %1145, %v368_v18  }
  0x3e   : > { %1023 = vmatmul.mubr.msk.bf16.gmra.mrb[4].mxu0 %vm441_vm0, %v1151_v17 }
  0x3f   : > { %1061 = vmatprep.mubr.msk.f32.mxu0 %vm1278_vm1, %v1279_v20 }
  0xb0   : > { %v372_v21 = vpop.permute.xlu0 %371  ;;  %v382_v22 = vpop.permute.xlu1 %381 }
  0xb4   : > { %v377_v23 = vpop.permute.xlu0 %376  ;;  %v387_v24 = vpop.permute.xlu1 %386 }
  0xb8   : > { %v392_v28 = vpop.permute.xlu0 %391  ;;  %v397_v34 = vpop.permute.xlu1 %396 }
  0xbc   : > { %v402_v41 = vpop.permute.xlu0 %401  ;;  %v407_v49 = vpop.permute.xlu1 %406 }
 0x109   : > { %v1020_v25 = vpop.f32.mrb[0].mxu0 }
 0x10a   : > { %v497_v26 = vadd.f32 %v1020_v25, %v382_v22  ;;  %v488_v27 = vpop.f32.mrb[1].mxu0 }
 0x10b   : > { %v489_v29 = vadd.f32 %v488_v27, %v372_v21  ;;  %v1021_v30 = vpop.f32.mrb[2].mxu0 }
 0x10c   : > { %v529_v31 = vmul.f32 0.2, %v497_v26  ;;  %v500_v32 = vadd.f32 %v1021_v30, %v387_v24  ;;  %v491_v33 = vpop.f32.mrb[3].mxu0  ;;  %vm521_vm2 = vcmp.gt.f32.partialorder %v497_v26, 0.0 }
 0x10d   : > { %v527_v35 = vmul.f32 0.2, %v489_v29  ;;  %v492_v36 = vadd.f32 %v491_v33, %v377_v23  ;;  %vm519_vm3 = vcmp.gt.f32.partialorder %v489_v29, 0.0 }
 0x10e   : > { %vm522_vm4 = vcmp.gt.f32.partialorder %v500_v32, 0.0  ;;  %v530_v37 = vmul.f32 0.2, %v500_v32  ;;  %v537_v39 = vsel %vm521_vm2, %v497_v26, %v529_v31 }
 0x10f   : > { %vm520_vm5 = vcmp.gt.f32.partialorder %v492_v36, 0.0  ;;  %v528_v38 = vmul.f32 0.2, %v492_v36  ;;  %v535_v43 = vsel %vm519_vm3, %v489_v29, %v527_v35 }
 0x110   : > { %v538_v40 = vsel %vm522_vm4, %v500_v32, %v530_v37 }
 0x111   : > { %v1024_v42 = vpop.f32.mrb[4].mxu0  ;;  %v536_v44 = vsel %vm520_vm5, %v492_v36, %v528_v38  ;;  %v1068_v45 = vpack.c.bf16 %v538_v40, %v537_v39 }
 0x112   : > { %v513_v46 = vadd.f32 %v1024_v42, %v402_v41  ;;  %v504_v47 = vpop.f32.mrb[5].mxu0  ;;  %v1065_v48 = vpack.c.bf16 %v536_v44, %v535_v43 }
 0x113   : > { %v505_v50 = vadd.f32 %v504_v47, %v392_v28  ;;  %v1025_v51 = vpop.f32.mrb[6].mxu0  ;;  %987 = vst [vmem:[%s1432_s8 + $0x8] sm:$0xff] %v1068_v45  }
 0x114   : > { %v533_v52 = vmul.f32 0.2, %v513_v46  ;;  %v516_v53 = vadd.f32 %v1025_v51, %v407_v49  ;;  %v507_v54 = vpop.f32.mrb[7].mxu0  ;;  %1066 = vmatpush3.bf16.msra.mxu1 %v1065_v48  ;;  %971 = vst [vmem:[%s1432_s8] sm:$0xff] %v1065_v48   ;;  %1078 = vmatpush3.bf16.msra.mxu0 %v1065_v48  ;;  %vm525_vm6 = vcmp.gt.f32.partialorder %v513_v46, 0.0 }
 0x115   : > { %v531_v55 = vmul.f32 0.2, %v505_v50  ;;  %v508_v56 = vadd.f32 %v507_v54, %v397_v34  ;;  %1067 = vmatprep.subr.bf16.mxu1 %v1277_v19  ;;  %1079 = vmatprep.subr.bf16.mxu0 %v1277_v19  ;;  %vm523_vm7 = vcmp.gt.f32.partialorder %v505_v50, 0.0 }
 0x116   : > { %vm526_vm8 = vcmp.gt.f32.partialorder %v516_v53, 0.0  ;;  %v534_v57 = vmul.f32 0.2, %v516_v53  ;;  %v541_v59 = vsel %vm525_vm6, %v513_v46, %v533_v52 }
 0x117   : > { %vm524_vm9 = vcmp.gt.f32.partialorder %v508_v56, 0.0  ;;  %v532_v58 = vmul.f32 0.2, %v508_v56  ;;  %v539_v61 = vsel %vm523_vm7, %v505_v50, %v531_v55 }
 0x118   : > { %1069 = vmatpush3.bf16.msra.mxu1 %v1068_v45  ;;  %1081 = vmatpush3.bf16.msra.mxu0 %v1068_v45  ;;  %v542_v60 = vsel %vm526_vm8, %v516_v53, %v534_v57 }
 0x119   : > { %1070 = vmatprep.subr.bf16.mxu1 %v1277_v19  ;;  %1082 = vmatprep.subr.bf16.mxu0 %v1277_v19  ;;  %v540_v62 = vsel %vm524_vm9, %v508_v56, %v532_v58  ;;  %v1074_v63 = vpack.c.bf16 %v542_v60, %v541_v59 }
 0x11a   : > { %v1071_v0 = vpack.c.bf16 %v540_v62, %v539_v61 }
 0x11b   : > { %989 = vst [vmem:[%s1432_s8 + $0x18] sm:$0xff] %v1074_v63  }
 0x11c   : > { %1072 = vmatpush3.bf16.msra.mxu1 %v1071_v0  ;;  %988 = vst [vmem:[%s1432_s8 + $0x10] sm:$0xff] %v1071_v0   ;;  %1084 = vmatpush3.bf16.msra.mxu0 %v1071_v0  ;;  %s1280_s8 = smov [#allocation3]  }
 0x11d   : > { %1073 = vmatprep.subr.bf16.mxu1 %v1277_v19  ;;  %1085 = vmatprep.subr.bf16.mxu0 %v1277_v19  ;;  %s1156_s9 = sshll.u32 %s1280_s8, 4  ;;  %s1157_s9 = int_to_ptr.vmem [resolvable:$false] %s1156_s9 }
 0x11e   : > { %s1158_s13 = scalar_lea.vmem %s1157_s9, 1024  ;;  %p1159_p2 = scmp.lt.s32.totalorder %s1454_s16, %s1157_s9 }
 0x11f   : > { %p1160_p3 = scmp.lt.s32.totalorder %s1158_s13, %s1152_s23 }
 0x120   : > { %1075 = vmatpush3.bf16.msra.mxu1 %v1074_v63  ;;  %1087 = vmatpush3.bf16.msra.mxu0 %v1074_v63 }
 0x121   : > { %p1161_p4 = por %p1160_p3, %p1159_p2 }
 0x123   : > { %1043 = vmatmul.mubr.msk.f32.vlgmr.msra.gmra.mrb[0].mxu1 %vm544_vm10, %v543_v1  ;;  %1062 = vmatmul.mubr.msk.f32.vlgmr.msra.gmra.mrb[8].mxu0 %vm544_vm10, %v619_v2  ;;  %p1162_p5 = pnand %p1161_p4, %p1155_p1 }
 0x125   : > { %1165 = shalt.err (!%p1162_p5)
}
 0x126   : > { %s1166_s14 = scalar_lea.hbm %s1460_s21, 512  ;;  %s1170_s19 = scalar_lea.hbm %s1575_s5, 1024 }
 0x127   : > { %p1167_p7 = scmp.ne.s32.totalorder %s1460_s21, %s1166_s14  ;;  %p1171_p12 = scmp.lt.u32.totalorder %s1460_s21, %s1575_s5 }
 0x128   : > { %p1172_p13 = scmp.lt.u32.totalorder %s1170_s19, %s1166_s14  ;;  %p1174_p1 = scmp.lt.u32.totalorder %s1166_s14, %s1460_s21 }
 0x129   : > { %p1168_p10 = pnand %p1167_p7, %p1365_p6 }
 0x12a   : > { %p1173_p0 = por %p1172_p13, %p1171_p12 }
 0x12b   : > { %p1169_p11 = pneg %p1168_p10 }
 0x12c   : > { %p1175_p2 = por %p1174_p1, %p1173_p0 }
 0x12e   : > { %p1176_p3 = pnand %p1175_p2, %p1169_p11 }
 0x130   : > { %1179 = shalt.err (!%p1176_p3)
}
 0x131   : > { %s1281_s23 = smov 64   ;;  %s1282_s13 = smov 128  }
 0x132   : > { %s1283_s15 = smov 4   ;;  %s923_s18 = sshll.u32 %s1386_s20, 2 }
 0x133   : > { %1088 = dma.vmem_to_hbm [thread:$0]  (%p1365_p6), %s1454_s16, 512, %s1460_s21, %s738_s22, %s1281_s23, %s1282_s13, %s1283_s15  }
 0x134   : > { %s340_s19 = scalar_lea.vmem [#allocation5], %s923_s18  ;;  %s742_s8 = sand.u32 1, %s1347_s28  }
 0x135   : > { %s776_s14 = sshll.u32 %s340_s19, 4  ;;  %s347_s9 = scalar_lea.vmem [#allocation7], %s923_s18  ;;  %s1488_s14 = int_to_ptr.vmem [resolvable:$true] %s776_s14 }
 0x136   : > { %s789_s29 = sshll.u32 %s347_s9, 4  ;;  %s1494_s2 = scalar_lea.hbm %s1576_s6, %s1452_s17  ;;  %s1496_s29 = int_to_ptr.vmem [resolvable:$true] %s789_s29 }
 0x137   : > { %s1502_s28 = scalar_lea.hbm %s1577_s7, %s1452_s17  ;;  %s1504_s21 = scalar_lea.sflag [#allocation6], %s742_s8 }
 0x138   : > { %s1180_s0 = scalar_lea.vmem %s1488_s14, 64  ;;  %s1284_s1 = smov [#allocation5]  }
 0x139   : > { %p1181_p4 = scmp.ne.s32.totalorder %s1488_s14, %s1180_s0  ;;  %s1184_s22 = sshll.u32 %s1284_s1, 4  ;;  %s1185_s22 = int_to_ptr.vmem [resolvable:$false] %s1184_s22 }
 0x13a   : > { %s1186_s23 = scalar_lea.vmem %s1185_s22, 128  ;;  %p1187_p10 = scmp.lt.s32.totalorder %s1488_s14, %s1185_s22 }
 0x13b   : > { %p1182_p5 = pnand %p1181_p4, %p1365_p6  ;;  %p1188_p11 = scmp.lt.s32.totalorder %s1186_s23, %s1180_s0 }
 0x13d   : > { %p1183_p7 = pneg %p1182_p5  ;;  %p1189_p12 = por %p1188_p11, %p1187_p10 }
 0x13f   : > { %p1190_p13 = pnand %p1189_p12, %p1183_p7 }
 0x1f6   : > { %v614_v3 = vpop.f32.mrb[0].mxu1  ;;  %v689_v4 = vpop.f32.mrb[8].mxu0 }
 0x1f7   : > { %618 = vst [vmem:[%s340_s19] sm:$0xf] %v614_v3  ;;  %693 = vst [vmem:[%s347_s9] sm:$0xf] %v689_v4  ;;  %v1044_v5 = vpop.f32.mrb[1].mxu1  ;;  %v1063_v6 = vpop.f32.mrb[9].mxu0 }
 0x1f8   : > { %1193 = shalt.err (!%p1190_p13)
}
 0x1f9   : > { %s1194_s17 = scalar_lea.hbm %s1494_s2, 64  ;;  %s1198_s18 = scalar_lea.hbm %s1576_s6, 128 }
 0x1fa   : > { %p1195_p0 = scmp.ne.s32.totalorder %s1494_s2, %s1194_s17  ;;  %p1199_p3 = scmp.lt.u32.totalorder %s1494_s2, %s1576_s6 }
 0x1fb   : > { %p1200_p4 = scmp.lt.u32.totalorder %s1198_s18, %s1194_s17  ;;  %p1202_p7 = scmp.lt.u32.totalorder %s1194_s17, %s1494_s2 }
 0x1fc   : > { %p1196_p1 = pnand %p1195_p0, %p1365_p6 }
 0x1fd   : > { %p1201_p5 = por %p1200_p4, %p1199_p3 }
 0x1fe   : > { %p1197_p2 = pneg %p1196_p1 }
 0x1ff   : > { %p1203_p10 = por %p1202_p7, %p1201_p5 }
 0x201   : > { %p1204_p11 = pnand %p1203_p10, %p1197_p2 }
 0x203   : > { %1207 = shalt.err (!%p1204_p11)
}
 0x204   : > { %1089 = dma.vmem_to_hbm [thread:$0]  (%p1365_p6), %s1488_s14, 64, %s1494_s2, %s1504_s21  }
 0x205   : > { %s1208_s9 = scalar_lea.vmem %s1496_s29, 64  ;;  %s1285_s20 = smov [#allocation7]  }
 0x206   : > { %p1209_p12 = scmp.ne.s32.totalorder %s1496_s29, %s1208_s9  ;;  %s1212_s16 = sshll.u32 %s1285_s20, 4  ;;  %s1213_s16 = int_to_ptr.vmem [resolvable:$false] %s1212_s16 }
 0x207   : > { %s1214_s0 = scalar_lea.vmem %s1213_s16, 128  ;;  %p1215_p1 = scmp.lt.s32.totalorder %s1496_s29, %s1213_s16 }
 0x208   : > { %p1210_p13 = pnand %p1209_p12, %p1365_p6  ;;  %p1216_p2 = scmp.lt.s32.totalorder %s1214_s0, %s1208_s9 }
 0x20a   : > { %p1211_p0 = pneg %p1210_p13  ;;  %p1217_p3 = por %p1216_p2, %p1215_p1 }
 0x20c   : > { %p1218_p4 = pnand %p1217_p3, %p1211_p0 }
 0x20e   : > { %1221 = shalt.err (!%p1218_p4)
}
 0x20f   : > { %s1222_s2 = scalar_lea.hbm %s1502_s28, 64  ;;  %s1226_s22 = scalar_lea.hbm %s1577_s7, 128 }
 0x210   : > { %p1223_p5 = scmp.ne.s32.totalorder %s1502_s28, %s1222_s2  ;;  %p1227_p11 = scmp.lt.u32.totalorder %s1502_s28, %s1577_s7 }
 0x211   : > { %p1228_p12 = scmp.lt.u32.totalorder %s1226_s22, %s1222_s2  ;;  %p1230_p0 = scmp.lt.u32.totalorder %s1222_s2, %s1502_s28 }
 0x212   : > { %p1224_p7 = pnand %p1223_p5, %p1365_p6 }
 0x213   : > { %p1229_p13 = por %p1228_p12, %p1227_p11 }
 0x214   : > { %p1225_p10 = pneg %p1224_p7 }
 0x215   : > { %p1231_p1 = por %p1230_p0, %p1229_p13 }
 0x217   : > { %p1232_p2 = pnand %p1231_p1, %p1225_p10 }
 0x219   : > { %1235 = shalt.err (!%p1232_p2)
}
 0x21a   : > { %1090 = dma.vmem_to_hbm [thread:$0]  (%p1365_p6), %s1496_s29, 64, %s1502_s28, %s1504_s21  }
 0x21b PF: > { %s801_s13 = sand.u32 1, %s1262_s24   ;;  %p1095_p3 = pnand %p917_p9, %p1371_p8 }
 0x21c   : > { %s802_s15 = scalar_lea.sflag [#allocation4], %s801_s13 }
 0x21d   : > { %1253 = dma.done.wait (!%p1095_p3), %s802_s15, 512  }
 0x21e   : > { %1255 = vsyncadd (!%p1095_p3), %s802_s15, 4294966784  ;;  %s1587_s18 = sadd.s32 4294967294, %s1274_s27  }
 0x21f   : > { %s810_s19 = sand.u32 1, %s1587_s18  }
 0x220   : > { %s811_s8 = scalar_lea.sflag [#allocation6], %s810_s19 }
 0x221   : > { %1257 = dma.done.wait (!%p1095_p3), %s811_s8, 128  }
 0x222   : > { %1259 = vsyncadd (!%p1095_p3), %s811_s8, 4294967168  ;;  %p21_p6 = scmp.ge.s32.totalorder %s1351_s30, 4   ;;  %s1588_s24 = smov %s1266_s25 }
 0x223   : > { %s1589_s25 = smov %s1270_s26  ;;  %s1590_s26 = smov %s1363_s10 }
 0x224   : > { %s1591_s27 = smov %s1351_s30  ;;  %23 = sbr.rel (!%p21_p6) target bundleno = 9 (0x9), region = 156 }
 0x22b   :  { %825 = vsyncpa [#allocation4], 1 }
 0x22c   :  { %827 = vsyncpa [#allocation4 + $0x1], 1 }
 0x22d   :  { %828 = vsyncpa [#allocation6], 1 }
 0x22e   :  { %830 = vsyncpa [#allocation6 + $0x1], 1 }

</bundles_post_ra>
